<compile_context>
chip_gen: v6e
topology: v6e:2x2x1
jax: 0.10.0
libtpu: 0.0.40
codegen_flags: <defaults>
</compile_context>

<pallas_src>
import functools

import jax
import jax.numpy as jnp
from jax.experimental import pallas as pl
from jax.experimental.pallas import tpu as pltpu

LANE = 128  # TPU vreg lane width


def _rehu_kernel(x_ref, o_ref, *, a, b):
    x = x_ref[...]
    xf = x.astype(jnp.float32)                      # f32 compute for bf16 parity
    quad = (0.5 * a) * xf * jnp.maximum(xf, 0.0)    # == clamp-min-0 of sign(x)*a/2*x^2
    clamped = jnp.minimum(quad, -b)                 # clamp max at -b (= d/2 > 0)
    o_ref[...] = jnp.maximum(clamped, xf + b).astype(o_ref.dtype)


def _choose_layout(n, itemsize):
    """Pick a wide lane-dense slab (rows, W) and a MiB-scale row block."""
    # Widest W (multiple of 128) that divides n -> no padding needed at all.
    for W in (8192, 4096, 2048, 1024, 512, 256, 128):
        if n % W == 0:
            break
    else:
        W = LANE  # pad the tail up to a multiple of 128 (< 128 extra elems)
    n_pad = ((n + W - 1) // W) * W
    rows = n_pad // W
    # Target ~2 MiB per block buffer.
    target_rows = max(1, (2 * 1024 * 1024) // (W * itemsize))
    if rows <= target_rows:
        row_block = rows  # single block == full array extent (always legal)
    else:
        # Multiple of 32 rows so f32/bf16/int8 all pack cleanly into vregs;
        # Pallas masks the ragged last block automatically.
        row_block = max(32, (target_rows // 32) * 32)
    return W, rows, row_block, n_pad


def rehu(x, d=1.0):
    """Apply ReHU elementwise to an array of any shape (matches torch semantics)."""
    a = 1.0 / d
    b = -d / 2.0

    orig_shape = x.shape
    orig_dtype = x.dtype
    flat = x.reshape(-1)
    n = flat.shape[0]

    W, rows, row_block, n_pad = _choose_layout(n, jnp.dtype(orig_dtype).itemsize)
    if n_pad != n:
        # Only taken when n is not a multiple of 128 (rare for activations).
        flat = jnp.pad(flat, (0, n_pad - n))
    slab = flat.reshape(rows, W)

    kernel = functools.partial(_rehu_kernel, a=a, b=b)
    grid = (pl.cdiv(rows, row_block),)

    out_slab = pl.pallas_call(
        kernel,
        out_shape=jax.ShapeDtypeStruct((rows, W), slab.dtype),
        grid=grid,
        in_specs=[pl.BlockSpec((row_block, W), lambda i: (i, 0))],
        out_specs=pl.BlockSpec((row_block, W), lambda i: (i, 0)),
        compiler_params=pltpu.CompilerParams(
            dimension_semantics=("parallel",),
            vmem_limit_bytes=32 * 1024 * 1024,
        ),
    )(slab)

    out = out_slab.reshape(-1)
    if n_pad != n:
        out = out[:n]
    return out.reshape(orig_shape).astype(orig_dtype)


def rehu_reference(x, d=1.0):
    """Pure-JAX reference mirroring the PyTorch forward exactly."""
    a = 1.0 / d
    b = -d / 2.0
    quad = jnp.sign(x) * a / 2.0 * x**2
    return jnp.maximum(jnp.clip(quad, 0.0, -b), x + b)


if __name__ == "__main__":
    key = jax.random.PRNGKey(0)
    # Small NCHW-like input, consistent with typical usage of ReHU on activations.
    x = jax.random.normal(key, (2, 4, 16, 16), dtype=jnp.float32) * 2.0

    d = 1.0  # ReHU(d) parameter; deterministic in-script

    out = rehu(x, d=d)
    jax.block_until_ready(out)

    ref = rehu_reference(x, d=d)
    assert out.shape == x.shape
    assert out.dtype == x.dtype
    assert jnp.allclose(out, ref, atol=1e-6, rtol=1e-6), "mismatch vs reference"

    print("KERNEL_OK")
</pallas_src>

<mosaic_0001>
module attributes {stable_mosaic.version = 11 : i64} {
  func.func @_rehu_kernel(%arg0: i32, %arg1: memref<1x2048xf32, #tpu.memory_space<vmem>>, %arg2: memref<1x2048xf32, #tpu.memory_space<vmem>>) attributes {dimension_semantics = [#tpu.dimension_semantics<parallel>], iteration_bounds = array<i64: 1>, scalar_prefetch = 0 : i64, scratch_operands = 0 : i64, tpu.core_type = #tpu.core_type<tc>, window_params = [{transform_indices = @transform_0, window_bounds = array<i64: 1, 2048>}, {transform_indices = @transform_1, window_bounds = array<i64: 1, 2048>}]} {
    %c0 = arith.constant 0 : index
    %c0_0 = arith.constant 0 : index
    %0 = vector.load %arg1[%c0, %c0_0] : memref<1x2048xf32, #tpu.memory_space<vmem>>, vector<1x2048xf32>
    %cst = arith.constant 5.000000e-01 : f32
    %1 = vector.broadcast %cst : f32 to vector<1x2048xf32>
    %2 = arith.mulf %1, %0 : vector<1x2048xf32>
    %cst_1 = arith.constant 0.000000e+00 : f32
    %3 = vector.broadcast %cst_1 : f32 to vector<1x2048xf32>
    %4 = arith.maximumf %0, %3 : vector<1x2048xf32>
    %5 = arith.mulf %2, %4 : vector<1x2048xf32>
    %cst_2 = arith.constant 5.000000e-01 : f32
    %6 = vector.broadcast %cst_2 : f32 to vector<1x2048xf32>
    %7 = arith.minimumf %5, %6 : vector<1x2048xf32>
    %cst_3 = arith.constant -5.000000e-01 : f32
    %8 = vector.broadcast %cst_3 : f32 to vector<1x2048xf32>
    %9 = arith.addf %0, %8 : vector<1x2048xf32>
    %10 = arith.maximumf %7, %9 : vector<1x2048xf32>
    %c0_4 = arith.constant 0 : index
    %c0_5 = arith.constant 0 : index
    %11 = vector.load %arg2[%c0_4, %c0_5] : memref<1x2048xf32, #tpu.memory_space<vmem>>, vector<1x2048xf32>
    tpu.vector_store %arg2[%c0_4, %c0_5], %10 {strides = array<i32>} : memref<1x2048xf32, #tpu.memory_space<vmem>>, vector<1x2048xf32>,
    return
  }
  func.func @transform_0(%arg0: i32) -> (i32, i32) {
    %c0_i32 = arith.constant 0 : i32
    %c0_i32_0 = arith.constant 0 : i32
    return %arg0, %c0_i32 : i32, i32
  }
  func.func @transform_1(%arg0: i32) -> (i32, i32) {
    %c0_i32 = arith.constant 0 : i32
    %c0_i32_0 = arith.constant 0 : i32
    return %arg0, %c0_i32 : i32, i32
  }
}

</mosaic_0001>

<bundles_post_ra>
// kernel: tpu_custom_call.1
= control target key start
LH: loop header
LB: loop body
LE: loop exit
PB: predicated region body
PF: predicated region fallthrough
CT: control target
= control target key end

     0   :  { %6 = vsyncpa [#allocation3], 0  ;;  %s116_s0 = inlined_call_operand.hbm [shape: f32[1,2048], index: 0, kind: input, shape index: {}]   ;;  %s117_s1 = inlined_call_operand.hbm [shape: f32[1,2048], index: 1, kind: output, shape index: {}]  }
   0x1   :  { %7 = vsyncpa [#allocation4], 0  ;;  %s98_s6 = smov [#allocation2]  }
   0x2   :  { %s14_s7 = sshll.u32 %s98_s6, 4  ;;  %s15_s7 = int_to_ptr.vmem [resolvable:$true] %s14_s7 }
   0x3   :  { %s62_s8 = scalar_lea.vmem %s15_s7, 256  ;;  %p67_p1 = scmp.lt.s32.totalorder %s15_s7, %s15_s7 }
   0x4   :  { %p63_p0 = scmp.ne.s32.totalorder %s15_s7, %s62_s8  ;;  %p68_p2 = scmp.lt.s32.totalorder %s62_s8, %s62_s8 }
   0x6   :  { %p69_p3 = por %p68_p2, %p67_p1 }
   0x8   :  { %p70_p4 = pnand %p69_p3, %p63_p0 }
   0xa   :  { %73 = shalt.err (!%p70_p4)
}
   0xb   :  { %17 = dma.hbm_to_vmem [thread:$0]  %s116_s0, 256, %s15_s7, [#allocation3]  }
   0xc   :  { %94 = dma.done.wait [#allocation3], 256  }
   0xd   :  { %95 = vsyncadd [#allocation3], 4294967040  ;;  %v21_v0 = vld [vmem:[#allocation2] sm:$0xff]  ;;  %v22_v1 = vld [vmem:[#allocation2 + $0x8] sm:$0xff]  ;;  %s99_s11 = smov [#allocation5]  }
   0xe   :  { %v23_v2 = vmul.f32 0.5, %v21_v0  ;;  %v25_v3 = vmax.f32 %v21_v0, 0.0  ;;  %v24_v4 = vmul.f32 0.5, %v22_v1  ;;  %v26_v5 = vmax.f32 %v22_v1, 0.0  ;;  %s43_s12 = sshll.u32 %s99_s11, 4  ;;  %s44_s12 = int_to_ptr.vmem [resolvable:$true] %s43_s12 }
   0xf   :  { %v31_v7 = vadd.f32 -0.5, %v21_v0  ;;  %v32_v9 = vadd.f32 -0.5, %v22_v1  ;;  %s74_s0 = scalar_lea.vmem %s44_s12, 256  ;;  %p79_p6 = scmp.lt.s32.totalorder %s44_s12, %s44_s12 }
  0x10   :  { %v27_v6 = vmul.f32 %v25_v3, %v23_v2  ;;  %v28_v8 = vmul.f32 %v26_v5, %v24_v4  ;;  %p75_p5 = scmp.ne.s32.totalorder %s44_s12, %s74_s0  ;;  %p80_p7 = scmp.lt.s32.totalorder %s74_s0, %s74_s0 }
  0x12   :  { %v29_v10 = vmin.f32 %v27_v6, 0.5  ;;  %v30_v11 = vmin.f32 %v28_v8, 0.5  ;;  %p81_p8 = por %p80_p7, %p79_p6 }
  0x14   :  { %v33_v12 = vmax.f32 %v29_v10, %v31_v7  ;;  %v34_v13 = vmax.f32 %v30_v11, %v32_v9  ;;  %p82_p9 = pnand %p81_p8, %p75_p5 }
  0x16   :  { %35 = vst [vmem:[#allocation5] sm:$0xff] %v33_v12  ;;  %36 = vst [vmem:[#allocation5 + $0x8] sm:$0xff] %v34_v13 }
  0x17   :  { %85 = shalt.err (!%p82_p9)
}
  0x18   :  { %46 = dma.vmem_to_hbm [thread:$0]  %s44_s12, 256, %s117_s1, [#allocation4]  }
  0x19   :  { %96 = dma.done.wait [#allocation4], 256  }
  0x1a   :  { %97 = vsyncadd [#allocation4], 4294967040 }
  0x1b   :  { %50 = vsyncpa [#allocation3], 1 }
  0x1c   :  { %51 = vsyncpa [#allocation4], 1 }

</bundles_post_ra>
